<compile_context>
chip_gen: v7x
topology: tpu7x:2x2x1
jax: 0.10.0
libtpu: 0.0.40
codegen_flags: <defaults>
</compile_context>

<pallas_src>
import math

import jax
import jax.numpy as jnp
from jax.experimental import pallas as pl
from jax.experimental.pallas import tpu as pltpu


_COMPILER_PARAMS = pltpu.CompilerParams(
    dimension_semantics=("parallel",),
    vmem_limit_bytes=32 * 1024 * 1024,
)


# ----------------------------------------------------------------------------- #
# Tiled matmul + BN(+ReLU6) kernel  (stem / head / classifier)
# ----------------------------------------------------------------------------- #
def _mm_bn_kernel(relu6):
    def kernel(x_ref, w_ref, s_ref, b_ref, o_ref):
        y = jnp.dot(x_ref[...], w_ref[...], preferred_element_type=jnp.float32)
        y = y * s_ref[...] + b_ref[...]          # f32 epilogue
        if relu6:
            y = jnp.clip(y, 0.0, 6.0)
        o_ref[...] = y.astype(o_ref.dtype)
    return kernel


def matmul_bn_act(x, w, scale, bias, *, relu6=False, out_dtype=jnp.bfloat16,
                  block_m=256):
    """(M,K)@(K,N) with fused per-channel scale/bias (+ ReLU6).  M is tiled so the
    Pallas pipeliner can double-buffer the row blocks; K and N stay whole."""
    M, K = x.shape
    N = w.shape[1]
    bm = M if M <= block_m else block_m
    return pl.pallas_call(
        _mm_bn_kernel(relu6),
        out_shape=jax.ShapeDtypeStruct((M, N), out_dtype),
        grid=(pl.cdiv(M, bm),),
        in_specs=[
            pl.BlockSpec((bm, K), lambda i: (i, 0)),
            pl.BlockSpec((K, N), lambda i: (0, 0)),
            pl.BlockSpec((1, N), lambda i: (0, 0)),
            pl.BlockSpec((1, N), lambda i: (0, 0)),
        ],
        out_specs=pl.BlockSpec((bm, N), lambda i: (i, 0)),
        compiler_params=_COMPILER_PARAMS,
    )(x, w, scale, bias)


# ----------------------------------------------------------------------------- #
# Fused inverted-residual kernels
#   expand 1x1 (+BN+ReLU6) -> depthwise 3x3 (+BN+ReLU6) -> project 1x1 (+BN)
#   (+ residual).  The expanded activation stays in VMEM scratch.
# ----------------------------------------------------------------------------- #
def _make_ir_kernel_s1(has_expand, has_residual):
    """Stride-1 fused block; one grid step = one batch element."""

    def kernel(*refs):
        if has_expand:
            (x_ref, we_ref, es_ref, eb_ref, wd_ref, ds_ref, db_ref,
             wp_ref, ps_ref, pb_ref, o_ref, ebuf) = refs
        else:
            (x_ref, wd_ref, ds_ref, db_ref,
             wp_ref, ps_ref, pb_ref, o_ref, ebuf) = refs
            we_ref = es_ref = eb_ref = None

        H, W = x_ref.shape[0], x_ref.shape[1]

        # ebuf holds the spatially zero-padded expanded activation (H+2, W+2, E)
        ebuf[...] = jnp.zeros(ebuf.shape, ebuf.dtype)

        def expand_row(h, carry):
            xr = x_ref[h]                                        # (W, Cin) bf16
            if has_expand:
                er = jnp.dot(xr, we_ref[...], preferred_element_type=jnp.float32)
                er = jnp.clip(er * es_ref[...] + eb_ref[...], 0.0, 6.0)
            else:                                                # t == 1: identity
                er = xr.astype(jnp.float32)
            ebuf[h + 1, 1:W + 1, :] = er
            return carry

        jax.lax.fori_loop(0, H, expand_row, 0)

        def out_row(oh, carry):
            acc = None
            for ky in range(3):
                row = ebuf[oh + ky]                              # (W+2, E) f32
                for kx in range(3):
                    tap = row[kx:kx + W, :] * wd_ref[ky * 3 + kx, :]
                    acc = tap if acc is None else acc + tap
            dw = jnp.clip(acc * ds_ref[...] + db_ref[...], 0.0, 6.0)
            pr = jnp.dot(dw.astype(jnp.bfloat16), wp_ref[...],
                         preferred_element_type=jnp.float32)     # (W, Cout)
            pr = pr * ps_ref[...] + pb_ref[...]
            if has_residual:                                     # reuse resident x
                pr = pr + x_ref[oh].astype(jnp.float32)
            o_ref[oh] = pr.astype(o_ref.dtype)
            return carry

        jax.lax.fori_loop(0, H, out_row, 0)

    return kernel


def _make_ir_kernel_s2(has_expand):
    """Stride-2 fused block.  The caller splits x into even / odd original
    columns; the kernel stores the expanded rows de-interleaved so every
    stride-2 depthwise tap is a contiguous slice (no strided loads, no 4x
    redundant work)."""

    def kernel(*refs):
        if has_expand:
            (xe_ref, xo_ref, we_ref, es_ref, eb_ref, wd_ref, ds_ref, db_ref,
             wp_ref, ps_ref, pb_ref, o_ref, buf_a, buf_b) = refs
        else:
            (xe_ref, xo_ref, wd_ref, ds_ref, db_ref,
             wp_ref, ps_ref, pb_ref, o_ref, buf_a, buf_b) = refs
            we_ref = es_ref = eb_ref = None

        H = xe_ref.shape[0]
        Ho, Wo = o_ref.shape[0], o_ref.shape[1]

        # buf_a[j] == padded column 2j (even), buf_b[j] == padded column 2j+1 (odd)
        buf_a[...] = jnp.zeros(buf_a.shape, buf_a.dtype)
        buf_b[...] = jnp.zeros(buf_b.shape, buf_b.dtype)

        def expand_row(h, carry):
            xe = xe_ref[h]                                       # orig even cols
            xo = xo_ref[h]                                       # orig odd  cols
            if has_expand:
                ee = jnp.dot(xe, we_ref[...], preferred_element_type=jnp.float32)
                ee = jnp.clip(ee * es_ref[...] + eb_ref[...], 0.0, 6.0)
                eo = jnp.dot(xo, we_ref[...], preferred_element_type=jnp.float32)
                eo = jnp.clip(eo * es_ref[...] + eb_ref[...], 0.0, 6.0)
            else:
                ee = xe.astype(jnp.float32)
                eo = xo.astype(jnp.float32)
            buf_b[h + 1, 0:Wo, :] = ee        # orig col 2j   -> padded col 2j+1
            buf_a[h + 1, 1:Wo + 1, :] = eo    # orig col 2j+1 -> padded col 2j+2
            return carry

        jax.lax.fori_loop(0, H, expand_row, 0)

        def out_row(oh, carry):
            acc = None
            for ky in range(3):
                ra = buf_a[2 * oh + ky]                          # (Wo+1, E)
                rb = buf_b[2 * oh + ky]
                taps = (ra[0:Wo, :] * wd_ref[ky * 3 + 0, :]      # kx = 0
                        + rb[0:Wo, :] * wd_ref[ky * 3 + 1, :]    # kx = 1
                        + ra[1:Wo + 1, :] * wd_ref[ky * 3 + 2, :])  # kx = 2
                acc = taps if acc is None else acc + taps
            dw = jnp.clip(acc * ds_ref[...] + db_ref[...], 0.0, 6.0)
            pr = jnp.dot(dw.astype(jnp.bfloat16), wp_ref[...],
                         preferred_element_type=jnp.float32)
            pr = pr * ps_ref[...] + pb_ref[...]                  # no residual (s=2)
            o_ref[oh] = pr.astype(o_ref.dtype)
            return carry

        jax.lax.fori_loop(0, Ho, out_row, 0)

    return kernel


def fused_inverted_residual(x, blk):
    """One MobileNetV2 inverted-residual block as a single fused pallas_call."""
    B, H, W, Cin = x.shape
    stride = blk['stride']
    has_expand = 'expand_w' in blk
    has_residual = blk['residual']
    E = blk['dw_w9'].shape[1]
    Cout = blk['proj_w'].shape[1]
    Ho, Wo = H // stride, W // stride

    weight_args = []
    weight_specs = []
    if has_expand:
        weight_args += [blk['expand_w'], blk['expand_s'], blk['expand_b']]
        weight_specs += [
            pl.BlockSpec((Cin, E), lambda b: (0, 0)),
            pl.BlockSpec((1, E), lambda b: (0, 0)),
            pl.BlockSpec((1, E), lambda b: (0, 0)),
        ]
    weight_args += [blk['dw_w9'], blk['dw_s'], blk['dw_b'],
                    blk['proj_w'], blk['proj_s'], blk['proj_b']]
    weight_specs += [
        pl.BlockSpec((9, E), lambda b: (0, 0)),
        pl.BlockSpec((1, E), lambda b: (0, 0)),
        pl.BlockSpec((1, E), lambda b: (0, 0)),
        pl.BlockSpec((E, Cout), lambda b: (0, 0)),
        pl.BlockSpec((1, Cout), lambda b: (0, 0)),
        pl.BlockSpec((1, Cout), lambda b: (0, 0)),
    ]

    if stride == 1:
        kernel = _make_ir_kernel_s1(has_expand, has_residual)
        x_args = [x]
        x_specs = [pl.BlockSpec((None, H, W, Cin), lambda b: (b, 0, 0, 0))]
        scratch = [pltpu.VMEM((H + 2, W + 2, E), jnp.float32)]
    else:
        # Even/odd column split (pure JAX, same total bytes as x) lets the
        # kernel produce the stride-2 output directly from contiguous slices.
        xe = x[:, :, 0::2, :]
        xo = x[:, :, 1::2, :]
        kernel = _make_ir_kernel_s2(has_expand)
        x_args = [xe, xo]
        x_specs = [pl.BlockSpec((None, H, Wo, Cin), lambda b: (b, 0, 0, 0)),
                   pl.BlockSpec((None, H, Wo, Cin), lambda b: (b, 0, 0, 0))]
        scratch = [pltpu.VMEM((H + 2, Wo + 1, E), jnp.float32),
                   pltpu.VMEM((H + 2, Wo + 1, E), jnp.float32)]

    return pl.pallas_call(
        kernel,
        out_shape=jax.ShapeDtypeStruct((B, Ho, Wo, Cout), x.dtype),
        grid=(B,),
        in_specs=x_specs + weight_specs,
        out_specs=pl.BlockSpec((None, Ho, Wo, Cout), lambda b: (b, 0, 0, 0)),
        scratch_shapes=scratch,
        compiler_params=_COMPILER_PARAMS,
    )(*x_args, *weight_args)


# ----------------------------------------------------------------------------- #
# Stem: full 3x3/s2 conv + BN + ReLU6
# ----------------------------------------------------------------------------- #
def conv3x3_stem(x, stem):
    # TODO(synk): fuse the 9-tap patch extraction into the kernel; the im2col is
    # kept in JAX since this 3-input-channel layer is a tiny fraction of the net.
    B, H, W, Cin = x.shape
    Ho, Wo = H // 2, W // 2
    xp = jnp.pad(x, ((0, 0), (1, 1), (1, 1), (0, 0)))
    taps = []
    for ky in range(3):
        for kx in range(3):
            taps.append(xp[:, ky:ky + 2 * Ho:2, kx:kx + 2 * Wo:2, :])
    patches = jnp.stack(taps, axis=-2)                       # (B, Ho, Wo, 9, Cin)
    x2 = patches.reshape(B * Ho * Wo, 9 * Cin)
    y = matmul_bn_act(x2, stem['w'], stem['s'], stem['b'], relu6=True)
    return y.reshape(B, Ho, Wo, -1)


# ----------------------------------------------------------------------------- #
# Parameters: deterministic synthetic init, weights pre-transposed / pre-cast
# and BatchNorm folded ONCE at build time.
# ----------------------------------------------------------------------------- #
def make_divisible(v, divisor=8, min_value=None):
    if min_value is None:
        min_value = divisor
    new_v = max(min_value, int(v + divisor / 2) // divisor * divisor)
    if new_v < 0.9 * v:
        new_v += divisor
    return new_v


def build_params(key, num_classes=1000):
    state = {'key': key}

    def nk():
        state['key'], sub = jax.random.split(state['key'])
        return sub

    def conv_w(cout, cin, kh, kw):
        n = kh * kw * cout
        return jax.random.normal(nk(), (cout, cin, kh, kw), jnp.float32) * math.sqrt(2.0 / n)

    def bn(c):
        # inference-mode BatchNorm folded to per-channel scale / bias (f32)
        gamma = 1.0 + 0.1 * jax.random.normal(nk(), (c,), jnp.float32)
        beta = 0.1 * jax.random.normal(nk(), (c,), jnp.float32)
        mean = 0.1 * jax.random.normal(nk(), (c,), jnp.float32)
        var = 1.0 + 0.1 * jax.random.uniform(nk(), (c,), jnp.float32)
        scale = gamma * jax.lax.rsqrt(var + 1e-5)
        bias = beta - mean * scale
        return scale.reshape(1, c), bias.reshape(1, c)

    width_mult = 1.0
    block_setting = [[1, 16, 1, 1], [6, 24, 2, 2], [6, 32, 3, 2], [6, 64, 4, 2],
                     [6, 96, 3, 1], [6, 160, 3, 2], [6, 320, 1, 1]]
    channels = make_divisible(32 * width_mult)
    outp_final = make_divisible(1280 * width_mult) if width_mult > 1.0 else 1280

    w = conv_w(channels, 3, 3, 3)                            # (C1, 3, 3, 3) OIHW
    s, b = bn(channels)
    stem = dict(
        w=jnp.transpose(w, (2, 3, 1, 0)).reshape(9 * 3, channels).astype(jnp.bfloat16),
        s=s, b=b)

    blocks = []
    for t, c, n, s_ in block_setting:
        outp = make_divisible(c * width_mult)
        for i in range(n):
            stride = s_ if i == 0 else 1
            inp = channels
            expand = inp * t
            blk = dict(stride=stride, residual=(stride == 1 and inp == outp))
            if t != 1:
                we = conv_w(expand, inp, 1, 1).reshape(expand, inp)
                blk['expand_w'] = jnp.transpose(we, (1, 0)).astype(jnp.bfloat16)  # (Cin, E)
                blk['expand_s'], blk['expand_b'] = bn(expand)
            wd = conv_w(expand, 1, 3, 3).reshape(expand, 9)
            blk['dw_w9'] = jnp.transpose(wd, (1, 0))                              # (9, E) f32
            blk['dw_s'], blk['dw_b'] = bn(expand)
            wp = conv_w(outp, expand, 1, 1).reshape(outp, expand)
            blk['proj_w'] = jnp.transpose(wp, (1, 0)).astype(jnp.bfloat16)        # (E, Cout)
            blk['proj_s'], blk['proj_b'] = bn(outp)
            blocks.append(blk)
            channels = outp

    wh = conv_w(outp_final, channels, 1, 1).reshape(outp_final, channels)
    hs, hb = bn(outp_final)
    head = dict(w=jnp.transpose(wh, (1, 0)).astype(jnp.bfloat16), s=hs, b=hb)

    lin_w = 0.01 * jax.random.normal(nk(), (num_classes, outp_final), jnp.float32)
    cls = dict(w=jnp.transpose(lin_w, (1, 0)).astype(jnp.bfloat16),
               s=jnp.ones((1, num_classes), jnp.float32),
               b=jnp.zeros((1, num_classes), jnp.float32))

    return dict(stem=stem, blocks=blocks, head=head, cls=cls, outp=outp_final)


# ----------------------------------------------------------------------------- #
# Forward pass
# ----------------------------------------------------------------------------- #
def forward(params, x_nchw):
    # PyTorch gives NCHW; kernels run NHWC / bf16 activations.
    x = jnp.transpose(x_nchw, (0, 2, 3, 1)).astype(jnp.bfloat16)
    x = conv3x3_stem(x, params['stem'])
    for blk in params['blocks']:
        x = fused_inverted_residual(x, blk)

    B, H, W, C = x.shape
    head = params['head']
    h = matmul_bn_act(x.reshape(B * H * W, C), head['w'], head['s'], head['b'],
                      relu6=True)
    h = h.reshape(B, H, W, -1)

    # AvgPool2d(input_size // 32) == global average pool here, then view(-1, outp)
    pooled = jnp.mean(h.astype(jnp.float32), axis=(1, 2))

    cls = params['cls']
    logits = matmul_bn_act(pooled.astype(jnp.bfloat16), cls['w'], cls['s'],
                           cls['b'], relu6=False, out_dtype=jnp.float32)
    return logits


# ----------------------------------------------------------------------------- #
if __name__ == "__main__":
    key = jax.random.PRNGKey(0)
    pkey, xkey = jax.random.split(key)

    NUM_CLASSES = 1000
    params = build_params(pkey, num_classes=NUM_CLASSES)

    # Small input consistent with the module: input_size must be divisible by 32.
    x = jax.random.normal(xkey, (2, 3, 32, 32), jnp.float32)   # NCHW, like PyTorch

    logits = forward(params, x)
    logits = jax.block_until_ready(logits)
    assert logits.shape == (2, NUM_CLASSES)
    assert bool(jnp.all(jnp.isfinite(logits)))
    print("KERNEL_OK")
</pallas_src>

<mosaic_0001>
module attributes {stable_mosaic.version = 11 : i64} {
  func.func @kernel(%arg0: i32, %arg1: memref<256x27xbf16, #tpu.memory_space<vmem>>, %arg2: memref<27x32xbf16, #tpu.memory_space<vmem>>, %arg3: memref<1x32xf32, #tpu.memory_space<vmem>>, %arg4: memref<1x32xf32, #tpu.memory_space<vmem>>, %arg5: memref<256x32xbf16, #tpu.memory_space<vmem>>) attributes {dimension_semantics = [#tpu.dimension_semantics<parallel>], iteration_bounds = array<i64: 2>, scalar_prefetch = 0 : i64, scratch_operands = 0 : i64, tpu.core_type = #tpu.core_type<tc>, window_params = [{transform_indices = @transform_0, window_bounds = array<i64: 256, 27>}, {pipeline_mode = #tpu.pipeline_mode<synchronous>, transform_indices = @transform_1, window_bounds = array<i64: 27, 32>}, {pipeline_mode = #tpu.pipeline_mode<synchronous>, transform_indices = @transform_2, window_bounds = array<i64: 1, 32>}, {pipeline_mode = #tpu.pipeline_mode<synchronous>, transform_indices = @transform_3, window_bounds = array<i64: 1, 32>}, {transform_indices = @transform_4, window_bounds = array<i64: 256, 32>}]} {
    %c0 = arith.constant 0 : index
    %c0_0 = arith.constant 0 : index
    %0 = vector.load %arg1[%c0, %c0_0] : memref<256x27xbf16, #tpu.memory_space<vmem>>, vector<256x27xbf16>
    %c0_1 = arith.constant 0 : index
    %c0_2 = arith.constant 0 : index
    %1 = vector.load %arg2[%c0_1, %c0_2] : memref<27x32xbf16, #tpu.memory_space<vmem>>, vector<27x32xbf16>
    %cst = arith.constant dense<0.000000e+00> : vector<256x32xf32>
    %2 = tpu.matmul %0, %1, %cst {dimension_numbers = #tpu.dot_dimension_numbers<[1], [0], [0], [1], [0, 0, 1, 1], [], []>} : vector<256x27xbf16>, vector<27x32xbf16>, vector<256x32xf32> -> vector<256x32xf32>
    %c0_3 = arith.constant 0 : index
    %c0_4 = arith.constant 0 : index
    %3 = vector.load %arg3[%c0_3, %c0_4] : memref<1x32xf32, #tpu.memory_space<vmem>>, vector<1x32xf32>
    %4 = vector.broadcast %3 : vector<1x32xf32> to vector<256x32xf32>
    %5 = arith.mulf %2, %4 : vector<256x32xf32>
    %c0_5 = arith.constant 0 : index
    %c0_6 = arith.constant 0 : index
    %6 = vector.load %arg4[%c0_5, %c0_6] : memref<1x32xf32, #tpu.memory_space<vmem>>, vector<1x32xf32>
    %7 = vector.broadcast %6 : vector<1x32xf32> to vector<256x32xf32>
    %8 = arith.addf %5, %7 : vector<256x32xf32>
    %cst_7 = arith.constant 0.000000e+00 : f32
    %cst_8 = arith.constant 6.000000e+00 : f32
    %9 = vector.broadcast %cst_7 : f32 to vector<256x32xf32>
    %10 = arith.maximumf %9, %8 : vector<256x32xf32>
    %11 = vector.broadcast %cst_8 : f32 to vector<256x32xf32>
    %12 = arith.minimumf %11, %10 : vector<256x32xf32>
    %13 = arith.truncf %12 : vector<256x32xf32> to vector<256x32xbf16>
    %c0_9 = arith.constant 0 : index
    %c0_10 = arith.constant 0 : index
    %14 = vector.load %arg5[%c0_9, %c0_10] : memref<256x32xbf16, #tpu.memory_space<vmem>>, vector<256x32xbf16>
    tpu.vector_store %arg5[%c0_9, %c0_10], %13 {strides = array<i32>} : memref<256x32xbf16, #tpu.memory_space<vmem>>, vector<256x32xbf16>,
    return
  }
  func.func @transform_0(%arg0: i32) -> (i32, i32) {
    %c0_i32 = arith.constant 0 : i32
    %c0_i32_0 = arith.constant 0 : i32
    return %arg0, %c0_i32 : i32, i32
  }
  func.func @transform_1(%arg0: i32) -> (i32, i32) {
    %c0_i32 = arith.constant 0 : i32
    %c0_i32_0 = arith.constant 0 : i32
    %c0_i32_1 = arith.constant 0 : i32
    return %c0_i32, %c0_i32_0 : i32, i32
  }
  func.func @transform_2(%arg0: i32) -> (i32, i32) {
    %c0_i32 = arith.constant 0 : i32
    %c0_i32_0 = arith.constant 0 : i32
    %c0_i32_1 = arith.constant 0 : i32
    return %c0_i32, %c0_i32_0 : i32, i32
  }
  func.func @transform_3(%arg0: i32) -> (i32, i32) {
    %c0_i32 = arith.constant 0 : i32
    %c0_i32_0 = arith.constant 0 : i32
    %c0_i32_1 = arith.constant 0 : i32
    return %c0_i32, %c0_i32_0 : i32, i32
  }
  func.func @transform_4(%arg0: i32) -> (i32, i32) {
    %c0_i32 = arith.constant 0 : i32
    %c0_i32_0 = arith.constant 0 : i32
    return %arg0, %c0_i32 : i32, i32
  }
}

</mosaic_0001>

<bundles_post_ra>
// kernel: tpu_custom_call.1
= control target key start
LH: loop header
LB: loop body
LE: loop exit
PB: predicated region body
PF: predicated region fallthrough
CT: control target
= control target key end

     0   :  { %s1135_s15 = smov 0   ;;  %s1339_s0 = inlined_call_operand.vmem [shape: bf16[512,27], index: 0, kind: input, shape index: {}]   ;;  %s1340_s1 = inlined_call_operand.vmem [shape: bf16[27,32], index: 1, kind: input, shape index: {}]   ;;  %s1341_s2 = inlined_call_operand.vmem [shape: f32[1,32], index: 2, kind: input, shape index: {}]   ;;  %s1342_s3 = inlined_call_operand.vmem [shape: f32[1,32], index: 3, kind: input, shape index: {}]   ;;  %s1343_s4 = inlined_call_operand.vmem [shape: bf16[512,32], index: 4, kind: output, shape index: {}]  }
   0x1 LB: > { %s905_s16 = sadd.s32 4294967295, %s1107_s15   ;;  %p909_p0 = scmp.ge.s32.totalorder %s1107_s15, 1  ;;  %s1107_s15 = sphi %s1135_s15, %s14_s15  }
   0x2   : > { %p163_p1 = scmp.lt.s32.totalorder %s1107_s15, 3 }
   0x4   : > { %p164_p2 = pnand %p909_p0, %p163_p1 }
   0x5   : > { %v1083_v0 = vld [vmem:[%s1340_s1] sm:$0xff] (!%p164_p2)   ;;  %vm378_vm0 = vcmask (!%p164_p2), 1044480   ;;  %v1084_v1 = vld [vmem:[%s1340_s1 + $0x8] sm:$0x3f] (!%p164_p2)   ;;  %vm379_vm1 = vcmask (!%p164_p2), 1045504   ;;  %s910_s21 = sshll.u32 (!%p164_p2), %s905_s16, 5 }
   0x6   : > { %167 = sbr.rel (%p164_p2) target bundleno = 277 (0x115), region = 36  ;;  %1034 = vmatprep.subr.bf16.mxu0 (!%p164_p2), %v1083_v0  ;;  %1070 = vmatprep.subr.bf16.mxu1 (!%p164_p2), %v1083_v0  ;;  %v1109_v2 = vmov (!%p164_p2), 65535   ;;  %p190_p3 = scmp.lt.s32.totalorder (!%p164_p2), %s910_s21, 63  ;;  %vm329_vm2 = vcmask (!%p164_p2), 220160   ;;  %v1194_v22 = vld [vmem:[%s1341_s2] ss:$0 sm:$0xff] (!%p164_p2) }
   0x7   : > { %1035 = vmatpush3.bf16.msra.mxu0 (!%p164_p2), %v1083_v0  ;;  %1072 = vmatpush3.bf16.msra.mxu1 (!%p164_p2), %v1083_v0  ;;  %v380_v3 = vsel (!%p164_p2), %vm378_vm0, 4294967295, %v1109_v2  ;;  %v1199_v24 = vld [vmem:[%s1342_s3] ss:$0 sm:$0xff] (!%p164_p2)  ;;  %vm816_vm3 = vcmask (!%p164_p2), 257024  }
   0x8   : > { %v381_v4 = vsel (!%p164_p2), %vm379_vm1, %v380_v3, 0 }
   0x9   : > { %v383_v5 = vand.u32 (!%p164_p2), %v1084_v1, %v381_v4 }
   0xb   : > { %1036 = vmatprep.subr.bf16.mxu0 (!%p164_p2), %v383_v5  ;;  %1071 = vmatprep.subr.bf16.mxu1 (!%p164_p2), %v383_v5 }
   0xc   : > { %1037 = vmatpush3.bf16.msra.mxu0 (!%p164_p2), %v383_v5  ;;  %1073 = vmatpush3.bf16.msra.mxu1 (!%p164_p2), %v383_v5 }
   0xd   : > { %s1345_s21 = smov (!%p190_p3, %s910_s21), 63 }
   0xe   : > { %s911_s22 = sshll.u32 %s1345_s21, 2 }
   0xf   : > { %s1157_s25 = scalar_lea.vmem %s1339_s0, %s911_s22  ;;  %s1222_s6 = scalar_lea.vmem %s1343_s4, %s911_s22 }
  0x10   : > { %v1085_v6 = vld [vmem:[%s1157_s25] sm:$0xff]   ;;  %v1087_v8 = vld [vmem:[%s1157_s25 + $0x8] sm:$0xff]   ;;  %v1089_v10 = vld [vmem:[%s1157_s25 + $0x10] sm:$0xff]  }
  0x11   : > { %v1086_v7 = vld [vmem:[%s1157_s25 + $0x40] sm:$0xff]   ;;  %1038 = vmatprep.mubr.msk.bf16.mxu0 %vm329_vm2, %v1085_v6  ;;  %v1088_v9 = vld [vmem:[%s1157_s25 + $0x48] sm:$0xff]   ;;  %v1090_v11 = vld [vmem:[%s1157_s25 + $0x50] sm:$0xff]  }
  0x12   : > { %1054 = vmatprep.mubr.msk.bf16.mxu1 %vm329_vm2, %v1086_v7  ;;  %1039 = vmatmul.mubr.msk.bf16.vlgmr.msra.gmra.mrb[0].mxu0 %vm329_vm2, %v1087_v8  ;;  %v1091_v12 = vld [vmem:[%s1157_s25 + $0x18] sm:$0xff]   ;;  %v1093_v14 = vld [vmem:[%s1157_s25 + $0x20] sm:$0xff]   ;;  %v1095_v16 = vld [vmem:[%s1157_s25 + $0x28] sm:$0xff]  }
  0x13   : > { %1055 = vmatmul.mubr.msk.bf16.vlgmr.msra.gmra.mrb[0].mxu1 %vm329_vm2, %v1088_v9  ;;  %1042 = vmatprep.mubr.msk.bf16.mxu0 %vm329_vm2, %v1089_v10  ;;  %v1092_v13 = vld [vmem:[%s1157_s25 + $0x58] sm:$0xff]   ;;  %v1094_v15 = vld [vmem:[%s1157_s25 + $0x60] sm:$0xff]   ;;  %v1096_v17 = vld [vmem:[%s1157_s25 + $0x68] sm:$0xff]  }
  0x14   : > { %1058 = vmatprep.mubr.msk.bf16.mxu1 %vm329_vm2, %v1090_v11  ;;  %v1097_v18 = vld [vmem:[%s1157_s25 + $0x30] sm:$0xff]   ;;  %v1099_v20 = vld [vmem:[%s1157_s25 + $0x38] sm:$0xff]  }
  0x15   : > { %v1098_v19 = vld [vmem:[%s1157_s25 + $0x70] sm:$0xff]   ;;  %v1100_v21 = vld [vmem:[%s1157_s25 + $0x78] sm:$0xff]  }
  0x1a   : > { %1043 = vmatmul.mubr.msk.bf16.gmra.mrb[4].mxu0 %vm329_vm2, %v1091_v12 }
  0x1b   : > { %1059 = vmatmul.mubr.msk.bf16.gmra.mrb[4].mxu1 %vm329_vm2, %v1092_v13  ;;  %1046 = vmatprep.mubr.msk.bf16.mxu0 %vm329_vm2, %v1093_v14 }
  0x1c   : > { %1062 = vmatprep.mubr.msk.bf16.mxu1 %vm329_vm2, %v1094_v15 }
  0x22   : > { %1047 = vmatmul.mubr.msk.bf16.gmra.mrb[8].mxu0 %vm329_vm2, %v1095_v16 }
  0x23   : > { %1063 = vmatmul.mubr.msk.bf16.gmra.mrb[8].mxu1 %vm329_vm2, %v1096_v17  ;;  %1050 = vmatprep.mubr.msk.bf16.mxu0 %vm329_vm2, %v1097_v18 }
  0x24   : > { %1066 = vmatprep.mubr.msk.bf16.mxu1 %vm329_vm2, %v1098_v19 }
  0x2a   : > { %1051 = vmatmul.mubr.msk.bf16.gmra.mrb[12].mxu0 %vm329_vm2, %v1099_v20 }
  0x2b   : > { %1067 = vmatmul.mubr.msk.bf16.gmra.mrb[12].mxu1 %vm329_vm2, %v1100_v21 }
  0xe5   : > { %v1040_v23 = vpop.f32.mrb[0].mxu0 }
  0xe6   : > { %v555_v25 = vmul.f32 %v1040_v23, %v1194_v22  ;;  %v1056_v26 = vpop.f32.mrb[0].mxu1  ;;  %v419_v27 = vpop.f32.mrb[1].mxu0 }
  0xe7   : > { %v571_v28 = vmul.f32 %v1056_v26, %v1194_v22  ;;  %v553_v29 = vmul.f32 %v1194_v22, %v419_v27  ;;  %v483_v30 = vpop.f32.mrb[1].mxu1  ;;  %v1041_v31 = vpop.f32.mrb[2].mxu0 }
  0xe8   : > { %v594_v32 = vadd.f32 %v1199_v24, %v555_v25  ;;  %v569_v33 = vmul.f32 %v1194_v22, %v483_v30  ;;  %v556_v34 = vmul.f32 %v1041_v31, %v1194_v22  ;;  %v1057_v35 = vpop.f32.mrb[2].mxu1  ;;  %v422_v36 = vpop.f32.mrb[3].mxu0 }
  0xe9   : > { %v610_v37 = vadd.f32 %v1199_v24, %v571_v28  ;;  %v592_v38 = vadd.f32 %v1199_v24, %v553_v29  ;;  %v572_v39 = vmul.f32 %v1057_v35, %v1194_v22  ;;  %v554_v40 = vmul.f32 %v1194_v22, %v422_v36  ;;  %v486_v41 = vpop.f32.mrb[3].mxu1 }
  0xea   : > { %v626_v42 = vmax.f32 %v594_v32, 0.0  ;;  %v608_v43 = vadd.f32 %v1199_v24, %v569_v33  ;;  %v595_v44 = vadd.f32 %v1199_v24, %v556_v34  ;;  %v570_v45 = vmul.f32 %v1194_v22, %v486_v41 }
  0xeb   : > { %v642_v46 = vmax.f32 %v610_v37, 0.0  ;;  %v624_v47 = vmax.f32 %v592_v38, 0.0  ;;  %v611_v48 = vadd.f32 %v1199_v24, %v572_v39  ;;  %v593_v49 = vadd.f32 %v1199_v24, %v554_v40 }
  0xec   : > { %v658_v50 = vmin.f32 %v626_v42, 6.0  ;;  %v640_v51 = vmax.f32 %v608_v43, 0.0  ;;  %v627_v52 = vmax.f32 %v595_v44, 0.0  ;;  %v609_v53 = vadd.f32 %v1199_v24, %v570_v45 }
  0xed   : > { %v674_v54 = vmin.f32 %v642_v46, 6.0  ;;  %v656_v55 = vmin.f32 %v624_v47, 6.0  ;;  %v643_v56 = vmax.f32 %v611_v48, 0.0  ;;  %v625_v57 = vmax.f32 %v593_v49, 0.0  ;;  %v1044_v58 = vpop.f32.mrb[4].mxu0 }
  0xee   : > { %v986_v59 = vpack.c.bf16 %v658_v50, %v658_v50  ;;  %v672_v60 = vmin.f32 %v640_v51, 6.0  ;;  %v659_v61 = vmin.f32 %v627_v52, 6.0  ;;  %v641_v62 = vmax.f32 %v609_v53, 0.0  ;;  %v1060_v63 = vpop.f32.mrb[4].mxu1  ;;  %v435_v0 = vpop.f32.mrb[5].mxu0 }
  0xef   : > { %v1002_v1 = vpack.c.bf16 %v674_v54, %v674_v54  ;;  %v984_v2 = vpack.c.bf16 %v656_v55, %v656_v55  ;;  %v675_v3 = vmin.f32 %v643_v56, 6.0  ;;  %v657_v4 = vmin.f32 %v625_v57, 6.0  ;;  %v499_v5 = vpop.f32.mrb[5].mxu1  ;;  %v1045_v6 = vpop.f32.mrb[6].mxu0 }
  0xf0   : > { %819 = vst.msk [vmem:[%s1222_s6 + $0x8] sm:$0xf] %vm816_vm3, %v986_v59  ;;  %v1000_v7 = vpack.c.bf16 %v672_v60, %v672_v60  ;;  %v987_v8 = vpack.c.bf16 %v659_v61, %v659_v61  ;;  %v673_v9 = vmin.f32 %v641_v62, 6.0  ;;  %v559_v10 = vmul.f32 %v1044_v58, %v1194_v22  ;;  %v1061_v11 = vpop.f32.mrb[6].mxu1  ;;  %v438_v12 = vpop.f32.mrb[7].mxu0 }
  0xf1   : > { %835 = vst.msk [vmem:[%s1222_s6 + $0x48] sm:$0xf] %vm816_vm3, %v1002_v1  ;;  %817 = vst.msk [vmem:[%s1222_s6] sm:$0xf] %vm816_vm3, %v984_v2  ;;  %v1003_v13 = vpack.c.bf16 %v675_v3, %v675_v3  ;;  %v985_v14 = vpack.c.bf16 %v657_v4, %v657_v4  ;;  %v575_v15 = vmul.f32 %v1060_v63, %v1194_v22  ;;  %v502_v17 = vpop.f32.mrb[7].mxu1 }
  0xf2   : > { %v557_v16 = vmul.f32 %v1194_v22, %v435_v0  ;;  %833 = vst.msk [vmem:[%s1222_s6 + $0x40] sm:$0xf] %vm816_vm3, %v1000_v7  ;;  %820 = vst.msk [vmem:[%s1222_s6 + $0xc] sm:$0xf] %vm816_vm3, %v987_v8  ;;  %v1001_v18 = vpack.c.bf16 %v673_v9, %v673_v9  ;;  %v598_v19 = vadd.f32 %v1199_v24, %v559_v10 }
  0xf3   : > { %v573_v20 = vmul.f32 %v1194_v22, %v499_v5  ;;  %v560_v21 = vmul.f32 %v1045_v6, %v1194_v22  ;;  %836 = vst.msk [vmem:[%s1222_s6 + $0x4c] sm:$0xf] %vm816_vm3, %v1003_v13  ;;  %818 = vst.msk [vmem:[%s1222_s6 + $0x4] sm:$0xf] %vm816_vm3, %v985_v14  ;;  %v614_v23 = vadd.f32 %v1199_v24, %v575_v15 }
  0xf4   : > { %v596_v25 = vadd.f32 %v1199_v24, %v557_v16  ;;  %v576_v26 = vmul.f32 %v1061_v11, %v1194_v22  ;;  %v558_v27 = vmul.f32 %v1194_v22, %v438_v12  ;;  %834 = vst.msk [vmem:[%s1222_s6 + $0x44] sm:$0xf] %vm816_vm3, %v1001_v18  ;;  %v630_v28 = vmax.f32 %v598_v19, 0.0 }
  0xf5   : > { %v612_v29 = vadd.f32 %v1199_v24, %v573_v20  ;;  %v599_v30 = vadd.f32 %v1199_v24, %v560_v21  ;;  %v574_v31 = vmul.f32 %v1194_v22, %v502_v17  ;;  %v646_v32 = vmax.f32 %v614_v23, 0.0  ;;  %v1048_v36 = vpop.f32.mrb[8].mxu0 }
  0xf6   : > { %v628_v33 = vmax.f32 %v596_v25, 0.0  ;;  %v615_v34 = vadd.f32 %v1199_v24, %v576_v26  ;;  %v597_v35 = vadd.f32 %v1199_v24, %v558_v27  ;;  %v662_v37 = vmin.f32 %v630_v28, 6.0  ;;  %v1064_v41 = vpop.f32.mrb[8].mxu1  ;;  %v451_v42 = vpop.f32.mrb[9].mxu0 }
  0xf7   : > { %v644_v38 = vmax.f32 %v612_v29, 0.0  ;;  %v631_v39 = vmax.f32 %v599_v30, 0.0  ;;  %v613_v40 = vadd.f32 %v1199_v24, %v574_v31  ;;  %v678_v43 = vmin.f32 %v646_v32, 6.0  ;;  %v515_v47 = vpop.f32.mrb[9].mxu1  ;;  %v1049_v48 = vpop.f32.mrb[10].mxu0 }
  0xf8   : > { %v660_v44 = vmin.f32 %v628_v33, 6.0  ;;  %v647_v45 = vmax.f32 %v615_v34, 0.0  ;;  %v629_v46 = vmax.f32 %v597_v35, 0.0  ;;  %v990_v49 = vpack.c.bf16 %v662_v37, %v662_v37  ;;  %v1065_v53 = vpop.f32.mrb[10].mxu1  ;;  %v454_v54 = vpop.f32.mrb[11].mxu0 }
  0xf9   : > { %v676_v50 = vmin.f32 %v644_v38, 6.0  ;;  %v663_v51 = vmin.f32 %v631_v39, 6.0  ;;  %v645_v52 = vmax.f32 %v613_v40, 0.0  ;;  %v1006_v55 = vpack.c.bf16 %v678_v43, %v678_v43  ;;  %v518_v59 = vpop.f32.mrb[11].mxu1 }
  0xfa   : > { %v988_v56 = vpack.c.bf16 %v660_v44, %v660_v44  ;;  %v679_v57 = vmin.f32 %v647_v45, 6.0  ;;  %v661_v58 = vmin.f32 %v629_v46, 6.0  ;;  %823 = vst.msk [vmem:[%s1222_s6 + $0x18] sm:$0xf] %vm816_vm3, %v990_v49  ;;  %v563_v63 = vmul.f32 %v1048_v36, %v1194_v22 }
  0xfb   : > { %v1004_v60 = vpack.c.bf16 %v676_v50, %v676_v50  ;;  %v991_v61 = vpack.c.bf16 %v663_v51, %v663_v51  ;;  %v677_v62 = vmin.f32 %v645_v52, 6.0  ;;  %839 = vst.msk [vmem:[%s1222_s6 + $0x58] sm:$0xf] %vm816_vm3, %v1006_v55  ;;  %v579_v2 = vmul.f32 %v1064_v41, %v1194_v22 }
  0xfc   : > { %821 = vst.msk [vmem:[%s1222_s6 + $0x10] sm:$0xf] %vm816_vm3, %v988_v56  ;;  %v1007_v0 = vpack.c.bf16 %v679_v57, %v679_v57  ;;  %v989_v1 = vpack.c.bf16 %v661_v58, %v661_v58  ;;  %v561_v3 = vmul.f32 %v1194_v22, %v451_v42  ;;  %v602_v5 = vadd.f32 %v1199_v24, %v563_v63 }
  0xfd   : > { %837 = vst.msk [vmem:[%s1222_s6 + $0x50] sm:$0xf] %vm816_vm3, %v1004_v60  ;;  %824 = vst.msk [vmem:[%s1222_s6 + $0x1c] sm:$0xf] %vm816_vm3, %v991_v61  ;;  %v1005_v4 = vpack.c.bf16 %v677_v62, %v677_v62  ;;  %v577_v6 = vmul.f32 %v1194_v22, %v515_v47  ;;  %v564_v7 = vmul.f32 %v1049_v48, %v1194_v22  ;;  %v1052_v12 = vpop.f32.mrb[12].mxu0 }
  0xfe   : > { %840 = vst.msk [vmem:[%s1222_s6 + $0x5c] sm:$0xf] %vm816_vm3, %v1007_v0  ;;  %822 = vst.msk [vmem:[%s1222_s6 + $0x14] sm:$0xf] %vm816_vm3, %v989_v1  ;;  %v618_v8 = vadd.f32 %v1199_v24, %v579_v2  ;;  %v600_v9 = vadd.f32 %v1199_v24, %v561_v3  ;;  %v580_v10 = vmul.f32 %v1065_v53, %v1194_v22  ;;  %v634_v13 = vmax.f32 %v602_v5, 0.0  ;;  %v1068_v17 = vpop.f32.mrb[12].mxu1 }
  0xff   : > { %v562_v11 = vmul.f32 %v1194_v22, %v454_v54  ;;  %838 = vst.msk [vmem:[%s1222_s6 + $0x54] sm:$0xf] %vm816_vm3, %v1005_v4  ;;  %v616_v14 = vadd.f32 %v1199_v24, %v577_v6  ;;  %v603_v15 = vadd.f32 %v1199_v24, %v564_v7  ;;  %v578_v16 = vmul.f32 %v1194_v22, %v518_v59  ;;  %v467_v18 = vpop.f32.mrb[13].mxu0  ;;  %v531_v25 = vpop.f32.mrb[13].mxu1 }
 0x100   : > { %v650_v19 = vmax.f32 %v618_v8, 0.0  ;;  %v632_v20 = vmax.f32 %v600_v9, 0.0  ;;  %v619_v21 = vadd.f32 %v1199_v24, %v580_v10  ;;  %v1053_v26 = vpop.f32.mrb[14].mxu0  ;;  %v666_v27 = vmin.f32 %v634_v13, 6.0  ;;  %v1069_v31 = vpop.f32.mrb[14].mxu1 }
 0x101   : > { %v601_v23 = vadd.f32 %v1199_v24, %v562_v11  ;;  %v648_v28 = vmax.f32 %v616_v14, 0.0  ;;  %v635_v29 = vmax.f32 %v603_v15, 0.0  ;;  %v617_v30 = vadd.f32 %v1199_v24, %v578_v16  ;;  %v470_v32 = vpop.f32.mrb[15].mxu0  ;;  %v534_v37 = vpop.f32.mrb[15].mxu1 }
 0x102   : > { %v682_v33 = vmin.f32 %v650_v19, 6.0  ;;  %v664_v34 = vmin.f32 %v632_v20, 6.0  ;;  %v651_v35 = vmax.f32 %v619_v21, 0.0  ;;  %v994_v38 = vpack.c.bf16 %v666_v27, %v666_v27 }
 0x103   : > { %v633_v36 = vmax.f32 %v601_v23, 0.0  ;;  %v680_v39 = vmin.f32 %v648_v28, 6.0  ;;  %v667_v40 = vmin.f32 %v635_v29, 6.0  ;;  %v649_v41 = vmax.f32 %v617_v30, 0.0 }
 0x104   : > { %v1010_v42 = vpack.c.bf16 %v682_v33, %v682_v33  ;;  %v992_v43 = vpack.c.bf16 %v664_v34, %v664_v34  ;;  %v683_v44 = vmin.f32 %v651_v35, 6.0  ;;  %827 = vst.msk [vmem:[%s1222_s6 + $0x28] sm:$0xf] %vm816_vm3, %v994_v38  ;;  %v567_v49 = vmul.f32 %v1052_v12, %v1194_v22 }
 0x105   : > { %v665_v45 = vmin.f32 %v633_v36, 6.0  ;;  %v1008_v46 = vpack.c.bf16 %v680_v39, %v680_v39  ;;  %v995_v47 = vpack.c.bf16 %v667_v40, %v667_v40  ;;  %v681_v48 = vmin.f32 %v649_v41, 6.0 }
 0x106   : > { %843 = vst.msk [vmem:[%s1222_s6 + $0x68] sm:$0xf] %vm816_vm3, %v1010_v42  ;;  %825 = vst.msk [vmem:[%s1222_s6 + $0x20] sm:$0xf] %vm816_vm3, %v992_v43  ;;  %v1011_v50 = vpack.c.bf16 %v683_v44, %v683_v44  ;;  %v583_v52 = vmul.f32 %v1068_v17, %v1194_v22  ;;  %v565_v53 = vmul.f32 %v1194_v22, %v467_v18 }
 0x107   : > { %v993_v51 = vpack.c.bf16 %v665_v45, %v665_v45  ;;  %841 = vst.msk [vmem:[%s1222_s6 + $0x60] sm:$0xf] %vm816_vm3, %v1008_v46  ;;  %828 = vst.msk [vmem:[%s1222_s6 + $0x2c] sm:$0xf] %vm816_vm3, %v995_v47  ;;  %v1009_v54 = vpack.c.bf16 %v681_v48, %v681_v48  ;;  %v606_v55 = vadd.f32 %v1199_v24, %v567_v49 }
 0x108   : > { %v581_v56 = vmul.f32 %v1194_v22, %v531_v25  ;;  %v568_v57 = vmul.f32 %v1053_v26, %v1194_v22  ;;  %844 = vst.msk [vmem:[%s1222_s6 + $0x6c] sm:$0xf] %vm816_vm3, %v1011_v50  ;;  %v622_v58 = vadd.f32 %v1199_v24, %v583_v52  ;;  %v604_v59 = vadd.f32 %v1199_v24, %v565_v53 }
 0x109   : > { %826 = vst.msk [vmem:[%s1222_s6 + $0x24] sm:$0xf] %vm816_vm3, %v993_v51  ;;  %v584_v60 = vmul.f32 %v1069_v31, %v1194_v22  ;;  %v566_v61 = vmul.f32 %v1194_v22, %v470_v32  ;;  %842 = vst.msk [vmem:[%s1222_s6 + $0x64] sm:$0xf] %vm816_vm3, %v1009_v54  ;;  %v638_v62 = vmax.f32 %v606_v55, 0.0  ;;  %v582_v1 = vmul.f32 %v1194_v22, %v534_v37 }
 0x10a   : > { %v620_v63 = vadd.f32 %v1199_v24, %v581_v56  ;;  %v607_v0 = vadd.f32 %v1199_v24, %v568_v57  ;;  %v654_v2 = vmax.f32 %v622_v58, 0.0  ;;  %v636_v3 = vmax.f32 %v604_v59, 0.0 }
 0x10b   : > { %v623_v4 = vadd.f32 %v1199_v24, %v584_v60  ;;  %v605_v5 = vadd.f32 %v1199_v24, %v566_v61  ;;  %v670_v6 = vmin.f32 %v638_v62, 6.0  ;;  %v621_v9 = vadd.f32 %v1199_v24, %v582_v1 }
 0x10c   : > { %v652_v7 = vmax.f32 %v620_v63, 0.0  ;;  %v639_v8 = vmax.f32 %v607_v0, 0.0  ;;  %v686_v10 = vmin.f32 %v654_v2, 6.0  ;;  %v668_v11 = vmin.f32 %v636_v3, 6.0 }
 0x10d   : > { %v655_v12 = vmax.f32 %v623_v4, 0.0  ;;  %v637_v13 = vmax.f32 %v605_v5, 0.0  ;;  %v998_v14 = vpack.c.bf16 %v670_v6, %v670_v6  ;;  %v653_v16 = vmax.f32 %v621_v9, 0.0 }
 0x10e   : > { %v684_v22 = vmin.f32 %v652_v7, 6.0  ;;  %v671_v15 = vmin.f32 %v639_v8, 6.0  ;;  %v1014_v17 = vpack.c.bf16 %v686_v10, %v686_v10  ;;  %v996_v18 = vpack.c.bf16 %v668_v11, %v668_v11 }
 0x10f   : > { %v687_v19 = vmin.f32 %v655_v12, 6.0  ;;  %v669_v20 = vmin.f32 %v637_v13, 6.0  ;;  %831 = vst.msk [vmem:[%s1222_s6 + $0x38] sm:$0xf] %vm816_vm3, %v998_v14  ;;  %v685_v23 = vmin.f32 %v653_v16, 6.0 }
 0x110   : > { %v1012_v24 = vpack.c.bf16 %v684_v22, %v684_v22  ;;  %v999_v21 = vpack.c.bf16 %v671_v15, %v671_v15  ;;  %847 = vst.msk [vmem:[%s1222_s6 + $0x78] sm:$0xf] %vm816_vm3, %v1014_v17  ;;  %829 = vst.msk [vmem:[%s1222_s6 + $0x30] sm:$0xf] %vm816_vm3, %v996_v18 }
 0x111   : > { %v1015_v25 = vpack.c.bf16 %v687_v19, %v687_v19  ;;  %v997_v26 = vpack.c.bf16 %v669_v20, %v669_v20  ;;  %v1013_v27 = vpack.c.bf16 %v685_v23, %v685_v23 }
 0x112   : > { %845 = vst.msk [vmem:[%s1222_s6 + $0x70] sm:$0xf] %vm816_vm3, %v1012_v24  ;;  %832 = vst.msk [vmem:[%s1222_s6 + $0x3c] sm:$0xf] %vm816_vm3, %v999_v21 }
 0x113   : > { %848 = vst.msk [vmem:[%s1222_s6 + $0x7c] sm:$0xf] %vm816_vm3, %v1015_v25  ;;  %830 = vst.msk [vmem:[%s1222_s6 + $0x34] sm:$0xf] %vm816_vm3, %v997_v26 }
 0x114   : > { %846 = vst.msk [vmem:[%s1222_s6 + $0x74] sm:$0xf] %vm816_vm3, %v1013_v27 }
 0x115 PF: > { %s14_s15 = sadd.s32 1, %s1107_s15  }
 0x116   : > { %p11_p4 = scmp.ge.s32.totalorder %s14_s15, 4  }
 0x118   :  { %13 = sbr.rel (!%p11_p4) target bundleno = 1 (0x1), region = 66 }

</bundles_post_ra>
